<compile_context>
chip_gen: v5e
topology: v5e:2x2
jax: 0.10.0
libtpu: 0.0.40
codegen_flags: <defaults>
</compile_context>

<pallas_src>
import functools

import jax
import jax.numpy as jnp
from jax import lax
from jax.experimental import pallas as pl
from jax.experimental.pallas import tpu as pltpu


def fuse_qkv_weights(wq, wk, wv, dtype=jnp.bfloat16):
    """Pre-fuse wq|wk|wv into one [d_emb, 3*d_head] slab, stored in bf16.

    Call ONCE at parameter-init time (hoisted out of the per-call path) so each
    forward pass does no weight concat and DMAs half the weight bytes.
    """
    return jnp.concatenate([wq, wk, wv], axis=1).astype(dtype)


def _attention_head_kernel(x_ref, wqkv_ref, o_ref, *, d_head):
    bt, T, d_emb = x_ref.shape

    # ---- Fused QKV projection: one MXU pass, bf16 operands, f32 accumulate. ----
    # Merging the leading (bt, T) dims leaves the lane dim untouched (cheap reshape).
    x2 = x_ref[...].reshape(bt * T, d_emb).astype(jnp.bfloat16)
    w = wqkv_ref[...].astype(jnp.bfloat16)            # no-op: wqkv arrives as bf16
    qkv = jnp.dot(x2, w, preferred_element_type=jnp.float32)     # (bt*T, 3*d_head) f32

    # Fold 1/sqrt(d_head) into q (T*d_head elements, not the (T,T) scores), in f32
    # BEFORE the bf16 cast so the scale isn't eaten by bf16 rounding.
    scale = 1.0 / (float(d_head) ** 0.5)
    q = (qkv[:, 0 * d_head:1 * d_head] * scale).astype(jnp.bfloat16).reshape(bt, T, d_head)
    k = qkv[:, 1 * d_head:2 * d_head].astype(jnp.bfloat16).reshape(bt, T, d_head)
    v = qkv[:, 2 * d_head:3 * d_head].astype(jnp.bfloat16).reshape(bt, T, d_head)

    # ---- Scores: contract d_head, batch over bt -- no explicit K transpose. ----
    s = lax.dot_general(q, k,
                        dimension_numbers=(((2,), (2,)), ((0,), (0,))),
                        preferred_element_type=jnp.float32)      # (bt, T, T) f32

    # ---- Numerically stable softmax over the last axis, kept in f32. ----
    # exp -> EUP slot; approx reciprocal -> EUP slot (VALU stays free).
    s = s - jnp.max(s, axis=-1, keepdims=True)
    p = jnp.exp(s)
    p = p * pl.reciprocal(jnp.sum(p, axis=-1, keepdims=True), approx=True)

    # ---- A @ V (batched over bt), bf16 operands, f32 accumulate. ----
    out = lax.dot_general(p.astype(jnp.bfloat16), v,
                          dimension_numbers=(((2,), (1,)), ((0,), (0,))),
                          preferred_element_type=jnp.float32)    # (bt, T, d_head)
    o_ref[...] = out.astype(o_ref.dtype)


def attention_head(x, wqkv, *, block_b=None):
    """x: [B, T, d_emb]; wqkv: [d_emb, 3*d_head] pre-fused (see fuse_qkv_weights)."""
    B, T, d_emb = x.shape
    assert wqkv.shape[0] == d_emb and wqkv.shape[1] % 3 == 0
    d_head = wqkv.shape[1] // 3

    # --- Generation-aware VMEM budget (25% headroom): v5e/v6e 128 MiB, v7x 64 MiB. ---
    try:
        vmem_cap = pltpu.get_tpu_info().vmem_capacity_bytes
    except Exception:
        vmem_cap = 64 * 1024 * 1024            # conservative fallback (v7x per-TC size)
    budget = int(0.75 * vmem_cap)

    # --- VMEM accounting: BlockSpec double-buffers x, out, and wqkv blocks; the f32
    # --- qkv accumulator, bf16 q/k/v copies, s AND p (T,T), and the f32 out are live. ---
    xb = x.dtype.itemsize
    wb = wqkv.dtype.itemsize
    ob = x.dtype.itemsize
    fixed_bytes = 2 * d_emb * 3 * d_head * wb            # wqkv, double-buffered
    per_b_bytes = (
        2 * T * d_emb * xb          # x block, double-buffered
        + 2 * T * d_head * ob       # out block, double-buffered
        + T * 3 * d_head * 4        # fused qkv accumulator (f32)
        + T * 3 * d_head * 2        # bf16 q/k/v copies
        + 2 * T * T * 4             # s and p simultaneously live (f32)
        + T * d_head * 4            # out accumulator (f32)
    )

    if block_b is None:
        block_b = max(1, min(B, (budget - fixed_bytes) // max(per_b_bytes, 1)))
        # v7x megacore: keep grid_b >= 2 so the "parallel" batch axis shards across
        # both TensorCores; essentially free on single-TC v5e/v6e.
        if B >= 2:
            block_b = min(block_b, B // 2)
        block_b = max(1, block_b)
        while B % block_b:
            block_b -= 1
    grid_b = B // block_b
    # TODO(synk): if fixed_bytes + per_b_bytes > budget (very large T) even block_b=1
    #             overflows VMEM; that is the flash-style KV-tiling case noted above.

    vmem_needed = fixed_bytes + block_b * per_b_bytes
    vmem_limit = int(min(budget, max(2 * vmem_needed, 16 * 1024 * 1024)))

    flops = 2 * B * T * d_emb * (3 * d_head) + 4 * B * T * T * d_head
    transcendentals = B * T * T + B * T
    bytes_accessed = x.size * xb + wqkv.size * wb + B * T * d_head * ob

    kernel = functools.partial(_attention_head_kernel, d_head=d_head)

    return pl.pallas_call(
        kernel,
        out_shape=jax.ShapeDtypeStruct((B, T, d_head), x.dtype),
        grid_spec=pltpu.PrefetchScalarGridSpec(
            num_scalar_prefetch=0,
            grid=(grid_b,),
            in_specs=[
                pl.BlockSpec((block_b, T, d_emb), lambda b: (b, 0, 0)),
                pl.BlockSpec((d_emb, 3 * d_head), lambda b: (0, 0)),
            ],
            out_specs=pl.BlockSpec((block_b, T, d_head), lambda b: (b, 0, 0)),
        ),
        compiler_params=pltpu.CompilerParams(
            dimension_semantics=("parallel",),
            vmem_limit_bytes=vmem_limit),
        cost_estimate=pl.CostEstimate(
            flops=flops,
            transcendentals=transcendentals,
            bytes_accessed=bytes_accessed),
    )(x, wqkv)


def reference_attention_head(x, wq, wk, wv):
    """Pure-JAX reference mirroring the PyTorch forward exactly (f32 throughout)."""
    d_head = wq.shape[1]
    q = x @ wq
    k = x @ wk
    v = x @ wv
    a = (q @ jnp.swapaxes(k, -1, -2)) / (d_head ** 0.5)
    a = jax.nn.softmax(a, axis=-1)
    return a @ v


if __name__ == "__main__":
    B, T, d_emb, d_head = 2, 8, 32, 16

    key = jax.random.PRNGKey(0)
    kx, kq, kk, kv = jax.random.split(key, 4)

    x = jax.random.normal(kx, (B, T, d_emb), dtype=jnp.float32)
    # Deterministic "Linear(bias=False)" weights, stored as [d_emb, d_head] (= torch W^T).
    wq = jax.random.normal(kq, (d_emb, d_head), dtype=jnp.float32) * (d_emb ** -0.5)
    wk = jax.random.normal(kk, (d_emb, d_head), dtype=jnp.float32) * (d_emb ** -0.5)
    wv = jax.random.normal(kv, (d_emb, d_head), dtype=jnp.float32) * (d_emb ** -0.5)

    # Hoisted out of the per-call path: fuse + cast the weights once at "init".
    wqkv = fuse_qkv_weights(wq, wk, wv)

    out = attention_head(x, wqkv)
    out = jax.block_until_ready(out)

    ref = reference_attention_head(x, wq, wk, wv)
    assert out.shape == (B, T, d_head)
    # Tolerance accounts for bf16 MXU operands + approx (EUP) softmax reciprocal.
    assert jnp.allclose(out, ref, atol=3e-2, rtol=3e-2), "mismatch vs reference"

    print("KERNEL_OK")
</pallas_src>

<mosaic_0001>
module attributes {stable_mosaic.version = 11 : i64} {
  func.func @_attention_head_kernel(%arg0: i32, %arg1: memref<1x8x32xf32, #tpu.memory_space<vmem>>, %arg2: memref<32x48xbf16, #tpu.memory_space<vmem>>, %arg3: memref<1x8x16xf32, #tpu.memory_space<vmem>>) attributes {dimension_semantics = [#tpu.dimension_semantics<parallel>], iteration_bounds = array<i64: 2>, scalar_prefetch = 0 : i64, scratch_operands = 0 : i64, tpu.core_type = #tpu.core_type<tc>, window_params = [{transform_indices = @transform_0, window_bounds = array<i64: 1, 8, 32>}, {pipeline_mode = #tpu.pipeline_mode<synchronous>, transform_indices = @transform_1, window_bounds = array<i64: 32, 48>}, {transform_indices = @transform_2, window_bounds = array<i64: 1, 8, 16>}]} {
    %c0 = arith.constant 0 : index
    %c0_0 = arith.constant 0 : index
    %c0_1 = arith.constant 0 : index
    %0 = vector.load %arg1[%c0, %c0_0, %c0_1] : memref<1x8x32xf32, #tpu.memory_space<vmem>>, vector<1x8x32xf32>
    %1 = vector.shape_cast %0 : vector<1x8x32xf32> to vector<8x32xf32>
    %2 = arith.truncf %1 : vector<8x32xf32> to vector<8x32xbf16>
    %c0_2 = arith.constant 0 : index
    %c0_3 = arith.constant 0 : index
    %3 = vector.load %arg2[%c0_2, %c0_3] : memref<32x48xbf16, #tpu.memory_space<vmem>>, vector<32x48xbf16>
    %cst = arith.constant dense<0.000000e+00> : vector<8x48xf32>
    %4 = tpu.matmul %2, %3, %cst {dimension_numbers = #tpu.dot_dimension_numbers<[1], [0], [0], [1], [0, 0, 1, 1], [], []>} : vector<8x32xbf16>, vector<32x48xbf16>, vector<8x48xf32> -> vector<8x48xf32>
    %5 = vector.extract_strided_slice %4 {offsets = [0, 0], sizes = [8, 16], strides = [1, 1]} : vector<8x48xf32> to vector<8x16xf32>
    %cst_4 = arith.constant 2.500000e-01 : f32
    %6 = vector.broadcast %cst_4 : f32 to vector<8x16xf32>
    %7 = arith.mulf %5, %6 : vector<8x16xf32>
    %8 = arith.truncf %7 : vector<8x16xf32> to vector<8x16xbf16>
    %9 = vector.shape_cast %8 : vector<8x16xbf16> to vector<1x8x16xbf16>
    %10 = vector.extract_strided_slice %4 {offsets = [0, 16], sizes = [8, 16], strides = [1, 1]} : vector<8x48xf32> to vector<8x16xf32>
    %11 = arith.truncf %10 : vector<8x16xf32> to vector<8x16xbf16>
    %12 = vector.shape_cast %11 : vector<8x16xbf16> to vector<1x8x16xbf16>
    %13 = vector.extract_strided_slice %4 {offsets = [0, 32], sizes = [8, 16], strides = [1, 1]} : vector<8x48xf32> to vector<8x16xf32>
    %14 = arith.truncf %13 : vector<8x16xf32> to vector<8x16xbf16>
    %15 = vector.shape_cast %14 : vector<8x16xbf16> to vector<1x8x16xbf16>
    %cst_5 = arith.constant dense<0.000000e+00> : vector<1x8x8xf32>
    %16 = tpu.matmul %9, %12, %cst_5 {dimension_numbers = #tpu.dot_dimension_numbers<[2], [2], [1], [1], [0, 0, 0, 1, 1, 1], [0], [0]>} : vector<1x8x16xbf16>, vector<1x8x16xbf16>, vector<1x8x8xf32> -> vector<1x8x8xf32>
    %cst_6 = arith.constant dense<0xFF800000> : vector<1x8xf32>
    %17 = vector.multi_reduction <maximumf>, %16, %cst_6 [2] : vector<1x8x8xf32> to vector<1x8xf32>
    %18 = vector.shape_cast %17 : vector<1x8xf32> to vector<1x8x1xf32>
    %19 = vector.broadcast %18 : vector<1x8x1xf32> to vector<1x8x8xf32>
    %20 = arith.subf %16, %19 : vector<1x8x8xf32>
    %21 = math.exp %20 : vector<1x8x8xf32>
    %cst_7 = arith.constant dense<0.000000e+00> : vector<1x8xf32>
    %22 = vector.multi_reduction <add>, %21, %cst_7 [2] : vector<1x8x8xf32> to vector<1x8xf32>
    %23 = vector.shape_cast %22 : vector<1x8xf32> to vector<1x8x1xf32>
    %24 = tpu.reciprocal %23 {approx = true} : vector<1x8x1xf32> -> vector<1x8x1xf32>
    %25 = vector.broadcast %24 : vector<1x8x1xf32> to vector<1x8x8xf32>
    %26 = arith.mulf %21, %25 : vector<1x8x8xf32>
    %27 = arith.truncf %26 : vector<1x8x8xf32> to vector<1x8x8xbf16>
    %cst_8 = arith.constant dense<0.000000e+00> : vector<1x8x16xf32>
    %28 = tpu.matmul %27, %15, %cst_8 {dimension_numbers = #tpu.dot_dimension_numbers<[2], [1], [1], [2], [0, 0, 0, 1, 1, 2], [0], [0]>} : vector<1x8x8xbf16>, vector<1x8x16xbf16>, vector<1x8x16xf32> -> vector<1x8x16xf32>
    %c0_9 = arith.constant 0 : index
    %c0_10 = arith.constant 0 : index
    %c0_11 = arith.constant 0 : index
    %29 = vector.load %arg3[%c0_9, %c0_10, %c0_11] : memref<1x8x16xf32, #tpu.memory_space<vmem>>, vector<1x8x16xf32>
    tpu.vector_store %arg3[%c0_9, %c0_10, %c0_11], %28 {strides = array<i32>} : memref<1x8x16xf32, #tpu.memory_space<vmem>>, vector<1x8x16xf32>,
    return
  }
  func.func @transform_0(%arg0: i32) -> (i32, i32, i32) {
    %c0_i32 = arith.constant 0 : i32
    %c0_i32_0 = arith.constant 0 : i32
    %c0_i32_1 = arith.constant 0 : i32
    return %arg0, %c0_i32, %c0_i32_0 : i32, i32, i32
  }
  func.func @transform_1(%arg0: i32) -> (i32, i32) {
    %c0_i32 = arith.constant 0 : i32
    %c0_i32_0 = arith.constant 0 : i32
    %c0_i32_1 = arith.constant 0 : i32
    return %c0_i32, %c0_i32_0 : i32, i32
  }
  func.func @transform_2(%arg0: i32) -> (i32, i32, i32) {
    %c0_i32 = arith.constant 0 : i32
    %c0_i32_0 = arith.constant 0 : i32
    %c0_i32_1 = arith.constant 0 : i32
    return %arg0, %c0_i32, %c0_i32_0 : i32, i32, i32
  }
}

</mosaic_0001>

<bundles_post_ra>
// kernel: tpu_custom_call.1
= control target key start
LH: loop header
LB: loop body
LE: loop exit
PB: predicated region body
PF: predicated region fallthrough
CT: control target
= control target key end

     0   :  { %7 = vsyncpa [#allocation3], 0  ;;  %s764_s0 = inlined_call_operand.hbm [shape: f32[2,8,32], index: 0, kind: input, shape index: {}]   ;;  %s765_s1 = inlined_call_operand.hbm [shape: bf16[32,48], index: 1, kind: input, shape index: {}]   ;;  %s766_s2 = inlined_call_operand.hbm [shape: f32[2,8,16], index: 2, kind: output, shape index: {}]  }
   0x1   :  { %9 = vsyncpa [#allocation3 + $0x1], 0 }
   0x2   :  { %10 = vsyncpa [#allocation6], 0 }
   0x3   :  { %11 = vsyncpa [#allocation4], 0 }
   0x4   :  { %13 = vsyncpa [#allocation4 + $0x1], 0  ;;  %s618_s9 = smov 0   ;;  %s620_s10 = smov 0  }
   0x5   :  { %s622_s11 = smov 0   ;;  %s624_s12 = smov 0  }
   0x6 LB: > { %s108_s15 = sshll.u32 %s765_s1, 4  ;;  %s642_s16 = sadd.s32 4294967295, %s596_s12   ;;  %s596_s12 = sphi %s624_s12, %s776_s12   ;;  %s592_s11 = sphi %s622_s11, %s775_s11   ;;  %s588_s10 = sphi %s620_s10, %s774_s10   ;;  %s584_s9 = sphi %s618_s9, %s773_s9   ;;  %s109_s15 = int_to_ptr.hbm [resolvable:$true] %s108_s15 }
   0x7   : > { %p375_p0 = scmp.ge.s32.totalorder %s596_s12, 1  ;;  %p40_p1 = scmp.eq.s32.totalorder %s642_s16, 0 }
   0x8   : > { %p97_p2 = scmp.lt.s32.totalorder %s596_s12, 3  ;;  %s598_s18 = smov [#allocation5]  }
   0x9   : > { %s110_s19 = sshll.u32 %s598_s18, 4  ;;  %s599_s20 = smov 64   ;;  %s111_s19 = int_to_ptr.vmem [resolvable:$true] %s110_s19 }
   0xa   : > { %p647_p3 = pnand %p375_p0, %p97_p2  ;;  %s600_s21 = smov 4  }
   0xb   : > { %s374_s22 = sadd.s32 4294967294, %s596_s12   ;;  %s658_s23 = sadd.s32 1, %s596_s12  }
   0xc   : > { %p409_p4 = pneg %p647_p3  ;;  %s26_s24 = sadd.s32 1, %s592_s11 }
   0xd   : > { %s23_s25 = ssub.s32 %s596_s12, %s658_s23  ;;  %p33_p7 = scmp.ne.s32.totalorder %s592_s11, %s588_s10 }
   0xe   : > { %p410_p6 = pnand %p409_p4, %p40_p1  ;;  %p24_p8 = scmp.eq.s32.totalorder %s23_s25, 0 }
   0xf   : > { %p34_p9 = scmp.eq.s32.totalorder %s596_s12, 0  ;;  %p39_p10 = scmp.ne.s32.totalorder %s588_s10, %s584_s9 }
  0x10   : > { %412 = dma.hbm_to_vmem [thread:$0]  (!%p410_p6), %s109_s15, 256, %s111_s19, [#allocation6], %s599_s20, %s599_s20, %s600_s21  }
  0x11   : > { %p84_p11 = scmp.eq.s32.totalorder %s642_s16, 1  ;;  %p674_p12 = por %p40_p1, %p39_p10 }
  0x12   : > { %s670_s26 = scalar_select %p24_p8, %s592_s11, %s26_s24  }
  0x13   : > { %p678_p13 = por %p84_p11, %p33_p7  ;;  %p90_p0 = scmp.eq.s32.totalorder %s374_s22, 1 }
  0x14   : > { %p35_p2 = por %p34_p9, %p33_p7  ;;  %s124_s29 = sand.u32 1, %s592_s11  }
  0x15   : > { %p683_p4 = por %p90_p0, %p39_p10  ;;  %p422_p6 = scmp.lt.s32.totalorder %s596_s12, 2 }
  0x16   : > { %s378_s3 = sshll.u32 %s124_s29, 3  ;;  %s379_s4 = sshll.u32 %s596_s12, 3 }
  0x17   : > { %s132_s7 = scalar_lea.hbm %s764_s0, %s379_s4  ;;  %s128_s13 = scalar_lea.vmem [#allocation2], %s378_s3 }
  0x18   : > { %s134_s8 = sshll.u32 %s132_s7, 4  ;;  %s136_s14 = sshll.u32 %s128_s13, 4  ;;  %s135_s8 = int_to_ptr.hbm [resolvable:$true] %s134_s8  ;;  %s137_s14 = int_to_ptr.vmem [resolvable:$true] %s136_s14 }
  0x19   : > { %p692_p8 = pnand %p422_p6, %p35_p2  ;;  %s125_s18 = scalar_lea.sflag [#allocation3], %s124_s29 }
  0x1a   : > { %s496_s19 = sshra.s32 %s135_s8, 4  ;;  %s503_s24 = scalar_lea.hbm %s764_s0, 16  ;;  %s497_s19 = int_to_ptr.hbm [resolvable:$true] %s496_s19 }
  0x1b   : > { %s498_s20 = scalar_lea.hbm %s497_s19, 8  ;;  %p500_p9 = pneg %p692_p8 }
  0x1c   : > { %p499_p7 = scmp.ne.s32.totalorder %s497_s19, %s498_s20  ;;  %p504_p0 = scmp.lt.s32.totalorder %s497_s19, %s764_s0 }
  0x1d   : > { %p505_p2 = scmp.lt.s32.totalorder %s503_s24, %s498_s20 }
  0x1e   : > { %p501_p10 = pnand %p500_p9, %p499_p7 }
  0x1f   : > { %p506_p6 = por %p505_p2, %p504_p0 }
  0x20   : > { %p502_p11 = pneg %p501_p10 }
  0x22   : > { %p507_p5 = pnand %p506_p6, %p502_p11 }
  0x24   : > { %510 = shalt.err (!%p507_p5)
}
  0x25   : > { %416 = dma.hbm_to_vmem [thread:$0]  (!%p692_p8), %s135_s8, 128, %s137_s14, %s125_s18  }
  0x26   : > { %145 = sbr.rel (%p647_p3) target bundleno = 848 (0x350), region = 28  ;;  %s709_s29 = sand.u32 (!%p647_p3), 1, %s588_s10  }
  0x27   : > { %s381_s4 = sshll.u32 (!%p647_p3), %s709_s29, 3  ;;  %s148_s5 = scalar_lea.sflag (!%p647_p3), [#allocation3], %s709_s29 }
  0x28   : > { %s151_s6 = scalar_lea.vmem (!%p647_p3), [#allocation2], %s381_s4 }
  0x2b   : > { %571 = dma.done.wait (%p674_p12), %s148_s5, 128  }
  0x2c   : > { %573 = vsyncadd (%p674_p12), %s148_s5, 4294967168 }
  0x2d   : > { %575 = dma.done.wait (%p40_p1), [#allocation6], 256  }
  0x2e   : > { %577 = vsyncadd (%p40_p1), [#allocation6], 4294967040  ;;  %v400_v0 = vld [vmem:[#allocation5 + $0x8] sm:$0xff]  ;;  %v399_v1 = vld [vmem:[#allocation5] sm:$0xff]  ;;  %vm197_vm0 = vcmask 261120   ;;  %s601_s17 = smov 112  }
  0x2f   : > { %207 = vmatpush.bf16.msra.mxu0 %v400_v0  ;;  %v179_v2 = vld [vmem:[%s151_s6] sm:$0xff]  ;;  %vm222_vm1 = vcmask 130048   ;;  %vm242_vm2 = vcmask 64512   ;;  %s602_s27 = smov 96   ;;  %vm260_vm3 = vcmask 1043456   ;;  %s396_s7 = sshll.u32 %s642_s16, 3 }
  0x30   : > { %v180_v3 = vpack.c.bf16 %v179_v2, %v179_v2  ;;  %s289_s14 = scalar_lea.hbm %s766_s2, %s396_s7  ;;  %s177_s15 = scalar_lea.vmem [#allocation7], %s381_s4 }
  0x31   : > { %s291_s18 = sshll.u32 %s177_s15, 4  ;;  %s293_s19 = sshll.u32 %s289_s14, 4  ;;  %s292_s18 = int_to_ptr.vmem [resolvable:$true] %s291_s18  ;;  %s294_s19 = int_to_ptr.hbm [resolvable:$true] %s293_s19 }
  0x32   : > { %s279_s20 = scalar_lea.sflag [#allocation4], %s709_s29  ;;  %s540_s21 = sshra.s32 %s294_s19, 4  ;;  %s541_s21 = int_to_ptr.hbm [resolvable:$true] %s540_s21 }
  0x33   : > { %208 = vmatpush.bf16.msra.mxu0 %v399_v1  ;;  %s542_s22 = scalar_lea.hbm %s541_s21, 8  ;;  %s546_s25 = scalar_lea.hbm %s766_s2, 16 }
  0x34   : > { %p543_p1 = scmp.ne.s32.totalorder %s541_s21, %s542_s22  ;;  %p547_p12 = scmp.lt.s32.totalorder %s541_s21, %s766_s2 }
  0x35   : > { %p548_p8 = scmp.lt.s32.totalorder %s546_s25, %s542_s22 }
  0x36   : > { %392 = vmatmul.msk.bf16.vlgmr.msra.gmra.mxu0 %vm197_vm0, %v180_v3  ;;  %p544_p3 = pnand %p543_p1, %p678_p13 }
  0x37   : > { %p549_p7 = por %p548_p8, %p547_p12 }
  0x38   : > { %p545_p5 = pneg %p544_p3 }
  0x3a   : > { %p550_p9 = pnand %p549_p7, %p545_p5 }
  0xb3   : > { %v210_v4 = vpop.f32.mrf.mxu0 }
  0xb4   : > { %v216_v5 = vpack.c.bf16 %v210_v4, %v210_v4  ;;  %v214_v11 = vmul.f32 0.25, %v210_v4 }
  0xb6   : > { %v218_v6 = vunpack.c.l.b16 %v216_v5  ;;  %v215_v12 = vpack.c.bf16 %v214_v11, %v214_v11 }
  0xb8   : > { %v219_v7 = vpack.c.b16 %v218_v6, %v218_v6 }
  0xba   : > { %220 = vrot.lane.b32.xlu0 %v219_v7, %s601_s17 }
  0xbb   : > { %v212_v8 = vpop.f32.mrf.mxu0 }
 0x12c   : > { %v221_v9 = vpop.permute.xlu0 %220 }
 0x12d   : > { %v227_v10 = vsel %vm222_vm1, %v221_v9, 0 }
 0x12e   : > { %236 = vmatpush.bf16.xpose.msra.mxu1 %v227_v10 }
 0x135   : > { %393 = vmatmul.msk.bf16.vlgmr.msra.gmra.mxu1 %vm222_vm1, %v215_v12 }
 0x1b2   : > { %v238_v13 = vpop.f32.mrf.mxu1 }
 0x1b3   : > { %v243_v14 = vsel %vm242_vm2, %v238_v13, -inf }
 0x1b4   : > { %244 = vmax.xlane.f32.xlu0 %v243_v14 }
 0x1ba   : > { %v240_v15 = vpop.f32.mrf.mxu1 }
 0x227   : > { %v245_v16 = vpop.xlane.xlu0 %244 }
 0x228   : > { %v246_v17 = vsub.f32 %v238_v13, %v245_v16 }
 0x22a   : > { %v247_v18 = vmul.f32 1.442695, %v246_v17 }
 0x22c   : > { %462 = vpow2.f32 %v247_v18 }
 0x232   : > { %v463_v19 = vpop.eup %462 }
 0x233   : > { %v249_v20 = vsel %vm242_vm2, %v463_v19, 0.0 }
 0x234   : > { %250 = vadd.xlane.f32.xlu1 %v249_v20 }
 0x24d   : > { %255 = vrot.lane.b32.xlu1 %v219_v7, %s602_s27 }
 0x2a7   : > { %v251_v21 = vpop.xlane.xlu1 %250 }
 0x2a8   : > { %464 = vrcp.f32 %v251_v21 }
 0x2ae   : > { %v465_v22 = vpop.eup %464 }
 0x2af   : > { %v253_v23 = vmul.f32 %v465_v22, %v463_v19 }
 0x2b1   : > { %v254_v26 = vpack.c.bf16 %v253_v23, %v253_v23 }
 0x2bf   : > { %v256_v24 = vpop.permute.xlu1 %255 }
 0x2c0   : > { %v262_v25 = vsel %vm260_vm3, %v256_v24, 0 }
 0x2c1   : > { %271 = vmatpush.bf16.msra.mxu2 %v262_v25 }
 0x2c4   : > { %394 = vmatmul.msk.bf16.vlgmr.msra.gmra.mxu2 %vm242_vm2, %v254_v26 }
 0x347   : > { %v273_v27 = vpop.f32.mrf.mxu2 }
 0x348   : > { %277 = vst.msk [vmem:[%s177_s15] sm:$0xff] %vm222_vm1, %v273_v27 }
 0x349   : > { %553 = shalt.err (!%p550_p9)
}
 0x34a   : > { %407 = dma.vmem_to_hbm [thread:$0]  (%p678_p13), %s292_s18, 128, %s294_s19, %s279_s20  }
 0x34f   : > { %v275_v28 = vpop.f32.mrf.mxu2 }
 0x350 PF: > { %s305_s29 = sand.u32 1, %s584_s9   ;;  %p772_p10 = scmp.ge.s32.totalorder %s596_s12, 2 }
 0x351   : > { %s306_s5 = scalar_lea.sflag [#allocation4], %s305_s29 }
 0x352   : > { %p418_p11 = pnand %p772_p10, %p683_p4 }
 0x354   : > { %p419_p0 = pneg %p418_p11 }
 0x356   : > { %579 = dma.done.wait (%p419_p0), %s306_s5, 128  }
 0x357   : > { %581 = vsyncadd (%p419_p0), %s306_s5, 4294967168  ;;  %p16_p2 = scmp.ge.s32.totalorder %s658_s23, 4   ;;  %s773_s9 = smov %s588_s10 }
 0x358   : > { %s774_s10 = smov %s592_s11  ;;  %s775_s11 = smov %s670_s26 }
 0x359   : > { %s776_s12 = smov %s658_s23  ;;  %18 = sbr.rel (!%p16_p2) target bundleno = 6 (0x6), region = 77 }
 0x35e   :  { %312 = vsyncpa [#allocation3], 1 }
 0x35f   :  { %314 = vsyncpa [#allocation3 + $0x1], 1 }
 0x360   :  { %315 = vsyncpa [#allocation6], 1 }
 0x361   :  { %316 = vsyncpa [#allocation4], 1 }
 0x362   :  { %318 = vsyncpa [#allocation4 + $0x1], 1 }

</bundles_post_ra>
